<compile_context>
chip_gen: v7x
topology: tpu7x:2x2x1
jax: 0.10.0
libtpu: 0.0.40
codegen_flags: <defaults>
</compile_context>

<pallas_src>
import functools

import jax
import jax.numpy as jnp
import numpy as np
from jax import lax
from jax.experimental import pallas as pl
from jax.experimental.pallas import tpu as pltpu

_LANES = 128
_SUBLANES = 8
# Per-input, per-pipeline-buffer block budget: 2 inputs x 2 buffers x 6 MiB
# = 24 MiB of double-buffered input tiles.
_BLOCK_BYTES = 6 * 1024 * 1024
_VMEM_LIMIT = 40 * 1024 * 1024   # fits v7x's 64 MiB physical VMEM per TC
_EPS = 1e-8


def _single_chunk_kernel(pred_ref, true_ref, sp_ref, st_ref):
    """Whole (split-)image fits one block: no accumulators, no pl.when."""
    p = pred_ref[...].astype(jnp.float32)   # (1, rows, 128)
    t = true_ref[...].astype(jnp.float32)
    sp_ref[...] = jnp.sum(p).reshape(1, 1, 1)
    st_ref[...] = jnp.sum(t).reshape(1, 1, 1)


def _make_multi_chunk_kernel(rows_total: int, rows_per_block: int):
    """rows_per_block is a multiple of 8; ragged handling is specialized statically."""
    ragged = (rows_total % rows_per_block) != 0

    def kernel(pred_ref, true_ref, sp_ref, st_ref, acc_p_ref, acc_t_ref):
        k = pl.program_id(1)                     # row-chunk (reduction) axis
        is_last = k == pl.num_programs(1) - 1

        @pl.when(k == 0)
        def _init():
            acc_p_ref[...] = jnp.zeros_like(acc_p_ref)
            acc_t_ref[...] = jnp.zeros_like(acc_t_ref)

        p = pred_ref[...].astype(jnp.float32)    # (1, R, 128)
        t = true_ref[...].astype(jnp.float32)

        def accumulate(pv, tv):
            # Pure-VPU vreg adds into (8, 128) accumulators; the XLU
            # cross-lane/sublane reduce happens only once, in the finalize.
            acc_p_ref[...] += jnp.sum(pv.reshape(-1, _SUBLANES, _LANES), axis=0)
            acc_t_ref[...] += jnp.sum(tv.reshape(-1, _SUBLANES, _LANES), axis=0)

        if ragged:
            # Mask (select, not multiply) only on the final, partial chunk so
            # the VALU slot never binds on the streaming steady state.
            @pl.when(jnp.logical_not(is_last))
            def _steady():
                accumulate(p, t)

            @pl.when(is_last)
            def _tail():
                valid = rows_total - k * rows_per_block
                row_ids = lax.broadcasted_iota(jnp.int32, p.shape, 1)
                keep = row_ids < valid
                accumulate(jnp.where(keep, p, 0.0), jnp.where(keep, t, 0.0))
        else:
            accumulate(p, t)

        @pl.when(is_last)
        def _finalize():
            sp_ref[...] = jnp.sum(acc_p_ref[...]).reshape(1, 1, 1)
            st_ref[...] = jnp.sum(acc_t_ref[...]).reshape(1, 1, 1)

    return kernel


@functools.partial(jax.jit, static_argnames=("block_rows",))
def flux_residual_fraction(x, y_pred, y_true, psf, *, block_rows=None):
    """Matches FluxResidualFraction.forward: x and psf are unused."""
    del x, psf
    B = y_pred.shape[0]
    pred2d = y_pred.reshape(B, -1)    # native dtype; no wrapper astype copy
    true2d = y_true.reshape(B, -1)
    N = pred2d.shape[1]

    # Rare path: lane-pad to a multiple of 128 (zeros do not change the sums).
    pad = (-N) % _LANES
    if pad:
        pred2d = jnp.pad(pred2d, ((0, 0), (0, pad)))
        true2d = jnp.pad(true2d, ((0, 0), (0, pad)))
    rows = (N + pad) // _LANES

    # On v7x the only multi-core lever is sharding the leading "parallel" grid
    # axis across the 2 TensorCores: if batch alone cannot occupy both cores,
    # split each image's rows into 2 independent partial reductions.
    split = 1
    if B == 1 and rows % 2 == 0 and rows >= 2 * _SUBLANES:
        split = 2
    G = B * split
    rows_s = rows // split

    # Sublane/lane-dense view: (G, rows_s, 128).
    pred3d = pred2d.reshape(G, rows_s, _LANES)
    true3d = true2d.reshape(G, rows_s, _LANES)

    # VMEM-budgeted rows per block (multiple of 8 sublanes, or full extent).
    itemsize = pred3d.dtype.itemsize
    r_target = max(_SUBLANES,
                   (_BLOCK_BYTES // (_LANES * itemsize)) // _SUBLANES * _SUBLANES)
    if block_rows is not None:        # test hook: force small multi-chunk blocks
        r_target = max(_SUBLANES, (block_rows // _SUBLANES) * _SUBLANES)

    if rows_s <= r_target:
        # Single-chunk fast path (common for small images).
        R = rows_s
        kernel = _single_chunk_kernel
        grid = (G,)
        in_map = lambda b: (b, 0, 0)
        out_map = lambda b: (b, 0, 0)
        scratch = []
        dim_sem = ("parallel",)
    else:
        R = r_target
        n_chunks = -(-rows_s // R)
        kernel = _make_multi_chunk_kernel(rows_s, R)
        grid = (G, n_chunks)
        in_map = lambda b, k: (b, k, 0)
        out_map = lambda b, k: (b, 0, 0)
        scratch = [pltpu.VMEM((_SUBLANES, _LANES), jnp.float32),   # vec sum(pred)
                   pltpu.VMEM((_SUBLANES, _LANES), jnp.float32)]   # vec sum(true)
        dim_sem = ("parallel", "arbitrary")

    sums = pl.pallas_call(
        kernel,
        out_shape=(jax.ShapeDtypeStruct((G, 1, 1), jnp.float32),
                   jax.ShapeDtypeStruct((G, 1, 1), jnp.float32)),
        grid_spec=pltpu.PrefetchScalarGridSpec(
            num_scalar_prefetch=0,
            grid=grid,
            in_specs=[pl.BlockSpec((1, R, _LANES), in_map),
                      pl.BlockSpec((1, R, _LANES), in_map)],
            out_specs=[pl.BlockSpec((1, 1, 1), out_map),
                       pl.BlockSpec((1, 1, 1), out_map)],
            scratch_shapes=scratch,
        ),
        compiler_params=pltpu.CompilerParams(
            # "parallel" on the leading axis is what lets v7x's two TCs split
            # the (virtual-)batch; single-TC v5e/v6e are insensitive to it.
            dimension_semantics=dim_sem,
            vmem_limit_bytes=_VMEM_LIMIT,
        ),
        cost_estimate=pl.CostEstimate(
            flops=2 * B * N,
            transcendentals=0,
            bytes_accessed=2 * B * N * itemsize + 2 * G * 4,
        ),
    )(pred3d, true3d)

    sum_p = sums[0].reshape(B, split).sum(axis=1)
    sum_t = sums[1].reshape(B, split).sum(axis=1)
    return sum_p / (sum_t + _EPS) - 1.0   # (B,), like pred.sum(dim=(1,2,3))/... - 1


if __name__ == "__main__":
    key = jax.random.PRNGKey(0)
    kx, kp, kt, kpsf = jax.random.split(key, 4)

    def ref_frf(p, t):
        p64 = np.asarray(p, dtype=np.float64)
        t64 = np.asarray(t, dtype=np.float64)
        return p64.sum(axis=(1, 2, 3)) / (t64.sum(axis=(1, 2, 3)) + 1e-8) - 1.0

    # 1) Small-image path (single chunk, grid=(B,)).
    B, C, H, W = 2, 4, 16, 16
    x = jax.random.normal(kx, (B, C, H, W), dtype=jnp.float32)
    # Positive "flux" images so the denominator is well conditioned.
    y_pred = jax.random.uniform(kp, (B, C, H, W), dtype=jnp.float32) + 0.1
    y_true = jax.random.uniform(kt, (B, C, H, W), dtype=jnp.float32) + 0.1
    psf = jax.random.uniform(kpsf, (B, 1, H, W), dtype=jnp.float32)

    frf = jax.block_until_ready(flux_residual_fraction(x, y_pred, y_true, psf))
    assert frf.shape == (B,)
    ref = ref_frf(y_pred, y_true)
    got = np.asarray(frf, dtype=np.float64)
    # FRF = p/t - 1 is a cancelling difference; tolerances sized for f32
    # accumulation (rtol on the ratio, atol on the FRF itself).
    assert np.allclose(got + 1.0, ref + 1.0, rtol=1e-5, atol=0.0), (got, ref)
    assert np.allclose(got, ref, atol=1e-4), (got, ref)

    # 2) Multi-chunk + ragged-tail path (forced via the block_rows test hook):
    #    3*24*24 = 1728 elems -> 14 rows of 128 lanes -> 2 chunks of 8 rows,
    #    last chunk masked to 6 valid rows.
    B2, C2, H2, W2 = 2, 3, 24, 24
    kp2, kt2 = jax.random.split(kp)
    y_pred2 = jax.random.uniform(kp2, (B2, C2, H2, W2), dtype=jnp.float32) + 0.1
    y_true2 = jax.random.uniform(kt2, (B2, C2, H2, W2), dtype=jnp.float32) + 0.1
    x2 = jnp.zeros((B2, C2, H2, W2), dtype=jnp.float32)
    psf2 = jnp.zeros((B2, 1, H2, W2), dtype=jnp.float32)
    frf2 = jax.block_until_ready(
        flux_residual_fraction(x2, y_pred2, y_true2, psf2, block_rows=8))
    ref2 = ref_frf(y_pred2, y_true2)
    got2 = np.asarray(frf2, dtype=np.float64)
    assert np.allclose(got2 + 1.0, ref2 + 1.0, rtol=1e-5, atol=0.0), (got2, ref2)
    assert np.allclose(got2, ref2, atol=1e-4), (got2, ref2)

    print("KERNEL_OK")
</pallas_src>

<mosaic_0001>
module attributes {stable_mosaic.version = 11 : i64} {
  func.func @_single_chunk_kernel(%arg0: i32, %arg1: memref<1x8x128xf32, #tpu.memory_space<vmem>>, %arg2: memref<1x8x128xf32, #tpu.memory_space<vmem>>, %arg3: memref<1x1x1xf32, #tpu.memory_space<vmem>>, %arg4: memref<1x1x1xf32, #tpu.memory_space<vmem>>) attributes {dimension_semantics = [#tpu.dimension_semantics<parallel>], iteration_bounds = array<i64: 2>, scalar_prefetch = 0 : i64, scratch_operands = 0 : i64, tpu.core_type = #tpu.core_type<tc>, window_params = [{transform_indices = @transform_0, window_bounds = array<i64: 1, 8, 128>}, {transform_indices = @transform_1, window_bounds = array<i64: 1, 8, 128>}, {transform_indices = @transform_2, window_bounds = array<i64: 1, 1, 1>}, {transform_indices = @transform_3, window_bounds = array<i64: 1, 1, 1>}]} {
    %c0 = arith.constant 0 : index
    %c0_0 = arith.constant 0 : index
    %c0_1 = arith.constant 0 : index
    %0 = vector.load %arg1[%c0, %c0_0, %c0_1] : memref<1x8x128xf32, #tpu.memory_space<vmem>>, vector<1x8x128xf32>
    %c0_2 = arith.constant 0 : index
    %c0_3 = arith.constant 0 : index
    %c0_4 = arith.constant 0 : index
    %1 = vector.load %arg2[%c0_2, %c0_3, %c0_4] : memref<1x8x128xf32, #tpu.memory_space<vmem>>, vector<1x8x128xf32>
    %2 = vector.shape_cast %0 : vector<1x8x128xf32> to vector<1x1x8x128xf32>
    %cst = arith.constant dense<0.000000e+00> : vector<1xf32>
    %3 = vector.multi_reduction <add>, %2, %cst [1, 2, 3] : vector<1x1x8x128xf32> to vector<1xf32>
    %4 = vector.shape_cast %3 : vector<1xf32> to vector<1x1x1x1xf32>
    %5 = vector.extract %4[0, 0, 0, 0] : f32 from vector<1x1x1x1xf32>
    %6 = vector.broadcast %5 : f32 to vector<1x1x1xf32>
    %c0_5 = arith.constant 0 : index
    %c0_6 = arith.constant 0 : index
    %c0_7 = arith.constant 0 : index
    %7 = vector.load %arg3[%c0_5, %c0_6, %c0_7] : memref<1x1x1xf32, #tpu.memory_space<vmem>>, vector<1x1x1xf32>
    tpu.vector_store %arg3[%c0_5, %c0_6, %c0_7], %6 {strides = array<i32>} : memref<1x1x1xf32, #tpu.memory_space<vmem>>, vector<1x1x1xf32>,
    %8 = vector.shape_cast %1 : vector<1x8x128xf32> to vector<1x1x8x128xf32>
    %cst_8 = arith.constant dense<0.000000e+00> : vector<1xf32>
    %9 = vector.multi_reduction <add>, %8, %cst_8 [1, 2, 3] : vector<1x1x8x128xf32> to vector<1xf32>
    %10 = vector.shape_cast %9 : vector<1xf32> to vector<1x1x1x1xf32>
    %11 = vector.extract %10[0, 0, 0, 0] : f32 from vector<1x1x1x1xf32>
    %12 = vector.broadcast %11 : f32 to vector<1x1x1xf32>
    %c0_9 = arith.constant 0 : index
    %c0_10 = arith.constant 0 : index
    %c0_11 = arith.constant 0 : index
    %13 = vector.load %arg4[%c0_9, %c0_10, %c0_11] : memref<1x1x1xf32, #tpu.memory_space<vmem>>, vector<1x1x1xf32>
    tpu.vector_store %arg4[%c0_9, %c0_10, %c0_11], %12 {strides = array<i32>} : memref<1x1x1xf32, #tpu.memory_space<vmem>>, vector<1x1x1xf32>,
    return
  }
  func.func @transform_0(%arg0: i32) -> (i32, i32, i32) {
    %c0_i32 = arith.constant 0 : i32
    %c0_i32_0 = arith.constant 0 : i32
    %c0_i32_1 = arith.constant 0 : i32
    return %arg0, %c0_i32, %c0_i32_0 : i32, i32, i32
  }
  func.func @transform_1(%arg0: i32) -> (i32, i32, i32) {
    %c0_i32 = arith.constant 0 : i32
    %c0_i32_0 = arith.constant 0 : i32
    %c0_i32_1 = arith.constant 0 : i32
    return %arg0, %c0_i32, %c0_i32_0 : i32, i32, i32
  }
  func.func @transform_2(%arg0: i32) -> (i32, i32, i32) {
    %c0_i32 = arith.constant 0 : i32
    %c0_i32_0 = arith.constant 0 : i32
    %c0_i32_1 = arith.constant 0 : i32
    return %arg0, %c0_i32, %c0_i32_0 : i32, i32, i32
  }
  func.func @transform_3(%arg0: i32) -> (i32, i32, i32) {
    %c0_i32 = arith.constant 0 : i32
    %c0_i32_0 = arith.constant 0 : i32
    %c0_i32_1 = arith.constant 0 : i32
    return %arg0, %c0_i32, %c0_i32_0 : i32, i32, i32
  }
}

</mosaic_0001>

<bundles_post_ra>
// kernel: flux_residual_fraction.1
= control target key start
LH: loop header
LB: loop body
LE: loop exit
PB: predicated region body
PF: predicated region fallthrough
CT: control target
= control target key end

     0   :  { %s348_s12 = smov 0   ;;  %s376_s0 = inlined_call_operand.vmem [shape: f32[2,8,128], index: 0, kind: input, shape index: {}]   ;;  %s377_s1 = inlined_call_operand.vmem [shape: f32[2,8,128], index: 1, kind: input, shape index: {}]   ;;  %s378_s2 = inlined_call_operand.vmem [shape: f32[2,1,1], index: 2, kind: output, shape index: {0}]   ;;  %s379_s3 = inlined_call_operand.vmem [shape: f32[2,1,1], index: 3, kind: output, shape index: {1}]  }
   0x1 LB: > { %s299_s13 = sadd.s32 4294967295, %s326_s12   ;;  %p303_p0 = scmp.ge.s32.totalorder %s326_s12, 1  ;;  %s326_s12 = sphi %s348_s12, %s14_s12  }
   0x2   : > { %p148_p1 = scmp.lt.s32.totalorder %s326_s12, 3 }
   0x4   : > { %p149_p2 = pnand %p303_p0, %p148_p1 }
   0x5   : > { %p176_p3 = scmp.lt.s32.totalorder (!%p149_p2), %s299_s13, 1  ;;  %vm202_vm0 = vcmask (!%p149_p2), 0  }
   0x6   : > { %152 = sbr.rel (%p149_p2) target bundleno = 227 (0xe3), region = 28 }
   0xd   : > { %s381_s13 = smov (!%p176_p3, %s299_s13), 1 }
   0xe   : > { %s304_s14 = sshll.u32 %s381_s13, 3  ;;  %s186_s23 = scalar_lea.vmem %s378_s2, %s381_s13 }
   0xf   : > { %s179_s17 = scalar_lea.vmem %s376_s0, %s304_s14  ;;  %s183_s20 = scalar_lea.vmem %s377_s1, %s304_s14 }
  0x10   : > { %v190_v0 = vld [vmem:[%s179_s17] sm:$0xff]  ;;  %s189_s27 = scalar_lea.vmem %s379_s3, %s381_s13 }
  0x11   : > { %192 = vadd.xlane.f32.xlu0 %v190_v0  ;;  %v191_v1 = vld [vmem:[%s183_s20] sm:$0xff] }
  0x15   : > { %204 = vadd.xlane.f32.xlu0 %v191_v1 }
  0x9e   : > { %v193_v2 = vpop.xlane.xlu0 %192 }
  0x9f   : > { %v194_v3 = vrot.slane %v193_v2, 4 }
  0xa1   : > { %v195_v4 = vadd.f32 %v194_v3, %v193_v2 }
  0xa2   : > { %v205_v5 = vpop.xlane.xlu0 %204 }
  0xa3   : > { %v196_v6 = vrot.slane %v195_v4, 2  ;;  %v206_v7 = vrot.slane %v205_v5, 4 }
  0xa5   : > { %v207_v8 = vadd.f32 %v206_v7, %v205_v5  ;;  %v197_v9 = vadd.f32 %v196_v6, %v195_v4 }
  0xa7   : > { %v208_v10 = vrot.slane %v207_v8, 2  ;;  %v198_v11 = vrot.slane %v197_v9, 1 }
  0xa9   : > { %v209_v12 = vadd.f32 %v208_v10, %v207_v8  ;;  %v199_v13 = vadd.f32 %v198_v11, %v197_v9 }
  0xab   : > { %308 = vpush %v199_v13  ;;  %v210_v14 = vrot.slane %v209_v12, 1 }
  0xad   : > { %v211_v15 = vadd.f32 %v210_v14, %v209_v12 }
  0xaf   : > { %310 = vpush %v211_v15 }
  0xdc   : > { %s309_s24 = spop %308 }
  0xdd   : > { %v201_v16 = vstv %s309_s24 }
  0xde   : > { %203 = vst.msk [vmem:[%s186_s23] sm:$0x1] %vm202_vm0, %v201_v16 }
  0xe0   : > { %s311_s28 = spop %310 }
  0xe1   : > { %v213_v17 = vstv %s311_s28 }
  0xe2   : > { %214 = vst.msk [vmem:[%s189_s27] sm:$0x1] %vm202_vm0, %v213_v17 }
  0xe3 PF: > { %s14_s12 = sadd.s32 1, %s326_s12  }
  0xe4   : > { %p11_p4 = scmp.ge.s32.totalorder %s14_s12, 4  }
  0xe6   :  { %13 = sbr.rel (!%p11_p4) target bundleno = 1 (0x1), region = 73 }

</bundles_post_ra>
